<compile_context>
chip_gen: v5e
topology: v5e:2x2
jax: 0.10.0
libtpu: 0.0.40
codegen_flags: <defaults>
</compile_context>

<pallas_src>
import functools

import jax
import jax.numpy as jnp
from jax import lax
from jax.experimental import pallas as pl
from jax.experimental.pallas import tpu as pltpu


def _round_up(x, m):
    return ((x + m - 1) // m) * m


def _largest_tile(dim_p, unit, cap):
    """Largest multiple of `unit` that divides dim_p and is <= cap (>= unit)."""
    best = unit
    t = unit
    limit = min(dim_p, cap)
    while t <= limit:
        if dim_p % t == 0:
            best = t
        t += unit
    return best


def _masked_linear_kernel(x_ref, w_ref, m_ref, b_ref, o_ref, *, l1, training):
    k = pl.program_id(2)

    # prune() + mask multiply, elementwise on the VPU (per weight tile).
    m = m_ref[...]
    if not training:
        m = jnp.where(jnp.abs(m) < l1, jnp.zeros_like(m), m)
    w = w_ref[...] * m                       # (tn, tk) masked weight tile

    # x @ w^T without materializing a transpose: contract last axis of both.
    contrib = lax.dot_general(
        x_ref[...], w,
        dimension_numbers=(((1,), (1,)), ((), ())),
        preferred_element_type=jnp.float32)  # (tm, tn) f32 on the MXU

    # Output block index (i, j) is constant across k -> o_ref stays resident in
    # VMEM and serves as the f32 accumulator (output dtype must stay float32).
    @pl.when(k == 0)
    def _():
        o_ref[...] = contrib + b_ref[...]    # (tm,tn) + (1,tn) broadcast

    @pl.when(k != 0)
    def _():
        o_ref[...] += contrib


@functools.partial(jax.jit, static_argnames=("l1", "training", "compute_dtype"))
def masked_linear(x, weight, mask, bias, *, l1=0.001, training=False,
                  compute_dtype=jnp.float32):
    """x: (B, d_i), weight/mask: (d_o, d_i), bias: (1, d_o); all f32 -> (B, d_o) f32."""
    B, d_i = x.shape
    d_o = weight.shape[0]
    cbytes = jnp.dtype(compute_dtype).itemsize

    # --- padding to hardware granularity only -------------------------------
    d_o_p = _round_up(d_o, 128)
    d_i_p = _round_up(d_i, 128)

    # Batch: minimal number of i-blocks (weight+mask are re-streamed num_i
    # times, so num_i is the expensive count); pad rows only up to tm*num_i.
    B_8 = _round_up(B, 8)
    num_i = pl.cdiv(B_8, 512)
    tm = _round_up(pl.cdiv(B_8, num_i), 8)
    B_p = num_i * tm

    # d_o / d_i: largest 128-multiples that DIVIDE the padded dims (no extra
    # weight/mask padding beyond the 128 granularity).
    tn = _largest_tile(d_o_p, 128, 512)
    if d_o_p // tn == 1 and d_o_p >= 256:
        # keep >= 2 j-blocks so v7x's two TensorCores both get work
        tn = _largest_tile(d_o_p, 128, d_o_p // 2)
    tk_cap = 2048 if cbytes <= 2 else 1024
    tk = _largest_tile(d_i_p, 128, tk_cap)

    grid = (B_p // tm, d_o_p // tn, d_i_p // tk)
    num_i, num_j, num_k = grid

    # --- pad + (optional) wrapper-side bf16 cast, before any DMA -------------
    x_p = x if (B_p == B and d_i_p == d_i) else jnp.pad(
        x, ((0, B_p - B), (0, d_i_p - d_i)))
    w_p = weight if (d_o_p == d_o and d_i_p == d_i) else jnp.pad(
        weight, ((0, d_o_p - d_o), (0, d_i_p - d_i)))
    m_p = mask if (d_o_p == d_o and d_i_p == d_i) else jnp.pad(
        mask, ((0, d_o_p - d_o), (0, d_i_p - d_i)))
    b_p = bias if d_o_p == d_o else jnp.pad(bias, ((0, 0), (0, d_o_p - d_o)))
    if compute_dtype != jnp.float32:
        # Halves DMA bytes + per-tile VMEM; accumulation stays f32 in-kernel.
        x_p = x_p.astype(compute_dtype)
        w_p = w_p.astype(compute_dtype)
        m_p = m_p.astype(compute_dtype)

    # --- VMEM budget (double-buffered tiles + resident output block) --------
    footprint = (2 * (tm * tk + 2 * tn * tk) * cbytes   # x, weight, mask (x2 buf)
                 + 2 * tm * tn * 4                      # output block
                 + 2 * tn * 4)                          # bias
    vmem_limit = min(48 * 1024 * 1024,
                     max(32 * 1024 * 1024, 2 * footprint))

    bytes_accessed = (num_j * B_p * d_i_p * cbytes        # x streamed per j-block
                      + num_i * 2 * d_o_p * d_i_p * cbytes  # weight + mask per i-block
                      + num_i * d_o_p * 4                 # bias
                      + B_p * d_o_p * 4)                  # output writeback
    cost = pl.CostEstimate(flops=2 * B_p * d_i_p * d_o_p,
                           transcendentals=0,
                           bytes_accessed=bytes_accessed)

    kernel = functools.partial(_masked_linear_kernel, l1=l1, training=training)

    out_p = pl.pallas_call(
        kernel,
        out_shape=jax.ShapeDtypeStruct((B_p, d_o_p), jnp.float32),
        grid_spec=pltpu.PrefetchScalarGridSpec(
            num_scalar_prefetch=0,
            grid=grid,
            in_specs=[
                pl.BlockSpec((tm, tk), lambda i, j, k: (i, k)),   # x
                pl.BlockSpec((tn, tk), lambda i, j, k: (j, k)),   # weight
                pl.BlockSpec((tn, tk), lambda i, j, k: (j, k)),   # mask
                pl.BlockSpec((1, tn), lambda i, j, k: (0, j)),    # bias
            ],
            out_specs=pl.BlockSpec((tm, tn), lambda i, j, k: (i, j)),
        ),
        compiler_params=pltpu.CompilerParams(
            dimension_semantics=("parallel", "parallel", "arbitrary"),
            vmem_limit_bytes=vmem_limit),
        cost_estimate=cost,
    )(x_p, w_p, m_p, b_p)

    return out_p[:B, :d_o]


def _xavier_uniform(key, shape):
    # torch.nn.init.xavier_uniform_: U(-a, a), a = sqrt(6 / (fan_in + fan_out))
    fan_out, fan_in = shape
    a = (6.0 / (fan_in + fan_out)) ** 0.5
    return jax.random.uniform(key, shape, jnp.float32, minval=-a, maxval=a)


def _reference(x, weight, mask, bias, *, l1, training):
    m = mask if training else jnp.where(jnp.abs(mask) < l1, 0.0, mask)
    return x @ (weight * m).T + bias


if __name__ == "__main__":
    l1 = 0.001
    key = jax.random.PRNGKey(0)

    # --- 1. Small shapes consistent with the module's forward (eval mode) ---
    B, d_i, d_o = 8, 32, 16
    kx, kw, km, kb, key = jax.random.split(key, 5)
    x = jax.random.normal(kx, (B, d_i), jnp.float32)
    weight = _xavier_uniform(kw, (d_o, d_i))
    # args.clsf_mask_one = False branch: xavier-initialized mask, so the
    # eval-mode prune() path actually zeros some entries.
    mask = _xavier_uniform(km, (d_o, d_i))
    bias = _xavier_uniform(kb, (1, d_o))

    out = jax.block_until_ready(
        masked_linear(x, weight, mask, bias, l1=l1, training=False))
    ref = _reference(x, weight, mask, bias, l1=l1, training=False)
    assert out.shape == (B, d_o)
    assert jnp.allclose(out, ref, atol=1e-5, rtol=1e-5)

    # training=True path (no pruning) on the same small shapes.
    out_tr = jax.block_until_ready(
        masked_linear(x, weight, mask, bias, l1=l1, training=True))
    ref_tr = _reference(x, weight, mask, bias, l1=l1, training=True)
    assert jnp.allclose(out_tr, ref_tr, atol=1e-5, rtol=1e-5)

    # --- 2. Larger, non-divisible shapes to exercise the 3-D tiled grid -----
    B2, d_i2, d_o2 = 300, 1536, 640     # -> grid (1, 5, 2) with tn=128, tk=768
    kx2, kw2, km2, kb2, key = jax.random.split(key, 5)
    x2 = jax.random.normal(kx2, (B2, d_i2), jnp.float32)
    w2 = _xavier_uniform(kw2, (d_o2, d_i2))
    m2 = _xavier_uniform(km2, (d_o2, d_i2))
    b2 = _xavier_uniform(kb2, (1, d_o2))

    out2 = jax.block_until_ready(
        masked_linear(x2, w2, m2, b2, l1=l1, training=False))
    ref2 = _reference(x2, w2, m2, b2, l1=l1, training=False)
    assert out2.shape == (B2, d_o2)
    assert jnp.allclose(out2, ref2, atol=1e-3, rtol=1e-3)

    # --- 3. Opt-in bf16 compute (wrapper-side cast, f32 accumulation) -------
    out2_bf16 = jax.block_until_ready(
        masked_linear(x2, w2, m2, b2, l1=l1, training=False,
                      compute_dtype=jnp.bfloat16))
    assert jnp.allclose(out2_bf16, ref2, atol=5e-2, rtol=5e-2)

    print("KERNEL_OK")
</pallas_src>

<mosaic_0001>
module attributes {stable_mosaic.version = 11 : i64} {
  func.func @_masked_linear_kernel(%arg0: i32, %arg1: i32, %arg2: i32, %arg3: memref<8x128xf32, #tpu.memory_space<vmem>>, %arg4: memref<128x128xf32, #tpu.memory_space<vmem>>, %arg5: memref<128x128xf32, #tpu.memory_space<vmem>>, %arg6: memref<1x128xf32, #tpu.memory_space<vmem>>, %arg7: memref<8x128xf32, #tpu.memory_space<vmem>>) attributes {dimension_semantics = [#tpu.dimension_semantics<parallel>, #tpu.dimension_semantics<parallel>, #tpu.dimension_semantics<arbitrary>], iteration_bounds = array<i64: 1, 1, 1>, scalar_prefetch = 0 : i64, scratch_operands = 0 : i64, tpu.core_type = #tpu.core_type<tc>, window_params = [{transform_indices = @transform_0, window_bounds = array<i64: 8, 128>}, {transform_indices = @transform_1, window_bounds = array<i64: 128, 128>}, {transform_indices = @transform_2, window_bounds = array<i64: 128, 128>}, {transform_indices = @transform_3, window_bounds = array<i64: 1, 128>}, {transform_indices = @transform_4, window_bounds = array<i64: 8, 128>}]} {
    %c0 = arith.constant 0 : index
    %c0_0 = arith.constant 0 : index
    %0 = vector.load %arg5[%c0, %c0_0] : memref<128x128xf32, #tpu.memory_space<vmem>>, vector<128x128xf32>
    %1 = math.absf %0 : vector<128x128xf32>
    %cst = arith.constant 1.000000e-03 : f32
    %2 = vector.broadcast %cst : f32 to vector<128x128xf32>
    %3 = arith.cmpf olt, %1, %2 : vector<128x128xf32>
    %cst_1 = arith.constant 0.000000e+00 : f32
    %4 = vector.broadcast %cst_1 : f32 to vector<128x128xf32>
    %5 = arith.select %3, %4, %0 : vector<128x128xi1>, vector<128x128xf32>
    %c0_2 = arith.constant 0 : index
    %c0_3 = arith.constant 0 : index
    %6 = vector.load %arg4[%c0_2, %c0_3] : memref<128x128xf32, #tpu.memory_space<vmem>>, vector<128x128xf32>
    %7 = arith.mulf %6, %5 : vector<128x128xf32>
    %c0_4 = arith.constant 0 : index
    %c0_5 = arith.constant 0 : index
    %8 = vector.load %arg3[%c0_4, %c0_5] : memref<8x128xf32, #tpu.memory_space<vmem>>, vector<8x128xf32>
    %cst_6 = arith.constant dense<0.000000e+00> : vector<8x128xf32>
    %9 = tpu.matmul %8, %7, %cst_6 {dimension_numbers = #tpu.dot_dimension_numbers<[1], [1], [0], [0], [0, 0, 1, 0], [], []>} : vector<8x128xf32>, vector<128x128xf32>, vector<8x128xf32> -> vector<8x128xf32>
    %c0_i32 = arith.constant 0 : i32
    %10 = arith.cmpi eq, %arg2, %c0_i32 : i32
    %11 = arith.extui %10 : i1 to i32
    %c0_i32_7 = arith.constant 0 : i32
    %12 = arith.cmpi ne, %11, %c0_i32_7 : i32
    scf.if %12 {
      %c0_10 = arith.constant 0 : index
      %c0_11 = arith.constant 0 : index
      %16 = vector.load %arg6[%c0_10, %c0_11] : memref<1x128xf32, #tpu.memory_space<vmem>>, vector<1x128xf32>
      %17 = vector.broadcast %16 : vector<1x128xf32> to vector<8x128xf32>
      %18 = arith.addf %9, %17 : vector<8x128xf32>
      %c0_12 = arith.constant 0 : index
      %c0_13 = arith.constant 0 : index
      %19 = vector.load %arg7[%c0_12, %c0_13] : memref<8x128xf32, #tpu.memory_space<vmem>>, vector<8x128xf32>
      tpu.vector_store %arg7[%c0_12, %c0_13], %18 {strides = array<i32>} : memref<8x128xf32, #tpu.memory_space<vmem>>, vector<8x128xf32>,
    } else {
    }
    %c0_i32_8 = arith.constant 0 : i32
    %13 = arith.cmpi ne, %arg2, %c0_i32_8 : i32
    %14 = arith.extui %13 : i1 to i32
    %c0_i32_9 = arith.constant 0 : i32
    %15 = arith.cmpi ne, %14, %c0_i32_9 : i32
    scf.if %15 {
      %c0_10 = arith.constant 0 : index
      %c0_11 = arith.constant 0 : index
      %16 = vector.load %arg7[%c0_10, %c0_11] : memref<8x128xf32, #tpu.memory_space<vmem>>, vector<8x128xf32>
      %17 = arith.addf %16, %9 : vector<8x128xf32>
      %c0_12 = arith.constant 0 : index
      %c0_13 = arith.constant 0 : index
      %18 = vector.load %arg7[%c0_12, %c0_13] : memref<8x128xf32, #tpu.memory_space<vmem>>, vector<8x128xf32>
      tpu.vector_store %arg7[%c0_12, %c0_13], %17 {strides = array<i32>} : memref<8x128xf32, #tpu.memory_space<vmem>>, vector<8x128xf32>,
    } else {
    }
    return
  }
  func.func @transform_0(%arg0: i32, %arg1: i32, %arg2: i32) -> (i32, i32) {
    %c0_i32 = arith.constant 0 : i32
    return %arg0, %arg2 : i32, i32
  }
  func.func @transform_1(%arg0: i32, %arg1: i32, %arg2: i32) -> (i32, i32) {
    %c0_i32 = arith.constant 0 : i32
    return %arg1, %arg2 : i32, i32
  }
  func.func @transform_2(%arg0: i32, %arg1: i32, %arg2: i32) -> (i32, i32) {
    %c0_i32 = arith.constant 0 : i32
    return %arg1, %arg2 : i32, i32
  }
  func.func @transform_3(%arg0: i32, %arg1: i32, %arg2: i32) -> (i32, i32) {
    %c0_i32 = arith.constant 0 : i32
    %c0_i32_0 = arith.constant 0 : i32
    return %c0_i32, %arg1 : i32, i32
  }
  func.func @transform_4(%arg0: i32, %arg1: i32, %arg2: i32) -> (i32, i32) {
    %c0_i32 = arith.constant 0 : i32
    return %arg0, %arg1 : i32, i32
  }
}

</mosaic_0001>

<bundles_post_ra>
// kernel: masked_linear.1
= control target key start
LH: loop header
LB: loop body
LE: loop exit
PB: predicated region body
PF: predicated region fallthrough
CT: control target
= control target key end

     0   :  { %s327_s0 = inlined_call_operand.vmem [shape: f32[8,128], index: 0, kind: input, shape index: {}]   ;;  %s328_s1 = inlined_call_operand.vmem [shape: f32[128,128], index: 1, kind: input, shape index: {}]   ;;  %s329_s2 = inlined_call_operand.vmem [shape: f32[128,128], index: 2, kind: input, shape index: {}]   ;;  %s330_s3 = inlined_call_operand.vmem [shape: f32[1,128], index: 3, kind: input, shape index: {}]   ;;  %s331_s4 = inlined_call_operand.hbm [shape: f32[8,128], index: 4, kind: output, shape index: {}]  }
   0x1   :  { %v33_v0 = vld [vmem:[%s329_s2 + $0x78] sm:$0xff]  ;;  %v32_v1 = vld [vmem:[%s329_s2 + $0x70] sm:$0xff]  ;;  %v31_v4 = vld [vmem:[%s329_s2 + $0x68] sm:$0xff] }
   0x2   :  { %v49_v2 = vand.u32 2147483647, %v33_v0  ;;  %v48_v3 = vand.u32 2147483647, %v32_v1  ;;  %v97_v5 = vld [vmem:[%s328_s1 + $0x78] sm:$0xff]  ;;  %v30_v7 = vld [vmem:[%s329_s2 + $0x60] sm:$0xff] }
   0x3   :  { %v47_v6 = vand.u32 2147483647, %v31_v4  ;;  %v96_v10 = vld [vmem:[%s328_s1 + $0x70] sm:$0xff]  ;;  %v46_v12 = vand.u32 2147483647, %v30_v7  ;;  %v29_v13 = vld [vmem:[%s329_s2 + $0x58] sm:$0xff] }
   0x4   :  { %vm65_vm0 = vcmp.lt.f32.partialorder %v49_v2, 0.001  ;;  %vm64_vm1 = vcmp.lt.f32.partialorder %v48_v3, 0.001  ;;  %v95_v16 = vld [vmem:[%s328_s1 + $0x68] sm:$0xff]  ;;  %v28_v18 = vld [vmem:[%s329_s2 + $0x50] sm:$0xff] }
   0x5   :  { %v81_v8 = vsel %vm65_vm0, 0.0, %v33_v0  ;;  %v80_v9 = vsel %vm64_vm1, 0.0, %v32_v1  ;;  %vm63_vm2 = vcmp.lt.f32.partialorder %v47_v6, 0.001  ;;  %vm62_vm3 = vcmp.lt.f32.partialorder %v46_v12, 0.001 }
   0x6   :  { %v113_v11 = vmul.f32 %v97_v5, %v81_v8  ;;  %v112_v14 = vmul.f32 %v96_v10, %v80_v9  ;;  %v79_v15 = vsel %vm63_vm2, 0.0, %v31_v4  ;;  %v45_v17 = vand.u32 2147483647, %v29_v13  ;;  %v94_v21 = vld [vmem:[%s328_s1 + $0x60] sm:$0xff]  ;;  %v27_v23 = vld [vmem:[%s329_s2 + $0x48] sm:$0xff] }
   0x7   :  { %v111_v19 = vmul.f32 %v95_v16, %v79_v15  ;;  %v78_v20 = vsel %vm62_vm3, 0.0, %v30_v7  ;;  %v44_v22 = vand.u32 2147483647, %v28_v18 }
   0x8   :  { %115 = vmatpush.xpose.msra.mxu0 %v113_v11  ;;  %vm61_vm4 = vcmp.lt.f32.partialorder %v45_v17, 0.001 }
   0xc   :  { %116 = vmatpush.xpose.msra.mxu0 %v112_v14 }
   0xd   :  { %9 = vsyncpa [#allocation3], 0  ;;  %v110_v24 = vmul.f32 %v94_v21, %v78_v20  ;;  %v77_v25 = vsel %vm61_vm4, 0.0, %v29_v13  ;;  %v93_v26 = vld [vmem:[%s328_s1 + $0x58] sm:$0xff]  ;;  %vm60_vm5 = vcmp.lt.f32.partialorder %v44_v22, 0.001 }
   0xe   :  { %v43_v27 = vand.u32 2147483647, %v27_v23  ;;  %v26_v28 = vld [vmem:[%s329_s2 + $0x40] sm:$0xff]  ;;  %v109_v29 = vmul.f32 %v93_v26, %v77_v25  ;;  %v76_v30 = vsel %vm60_vm5, 0.0, %v28_v18  ;;  %v92_v31 = vld [vmem:[%s328_s1 + $0x50] sm:$0xff]  ;;  %v25_v33 = vld [vmem:[%s329_s2 + $0x38] sm:$0xff] }
   0xf   :  { %v42_v32 = vand.u32 2147483647, %v26_v28  ;;  %v108_v34 = vmul.f32 %v92_v31, %v76_v30  ;;  %v91_v36 = vld [vmem:[%s328_s1 + $0x48] sm:$0xff]  ;;  %v41_v37 = vand.u32 2147483647, %v25_v33  ;;  %v24_v38 = vld [vmem:[%s329_s2 + $0x30] sm:$0xff] }
  0x10   :  { %117 = vmatpush.xpose.msra.mxu0 %v111_v19  ;;  %vm59_vm6 = vcmp.lt.f32.partialorder %v43_v27, 0.001  ;;  %v90_v41 = vld [vmem:[%s328_s1 + $0x40] sm:$0xff]  ;;  %v40_v42 = vand.u32 2147483647, %v24_v38  ;;  %v23_v43 = vld [vmem:[%s329_s2 + $0x28] sm:$0xff] }
  0x11   :  { %v75_v35 = vsel %vm59_vm6, 0.0, %v27_v23  ;;  %vm58_vm7 = vcmp.lt.f32.partialorder %v42_v32, 0.001  ;;  %vm57_vm8 = vcmp.lt.f32.partialorder %v41_v37, 0.001  ;;  %v89_v46 = vld [vmem:[%s328_s1 + $0x38] sm:$0xff] }
  0x12   :  { %v107_v39 = vmul.f32 %v91_v36, %v75_v35  ;;  %v74_v40 = vsel %vm58_vm7, 0.0, %v26_v28  ;;  %v73_v45 = vsel %vm57_vm8, 0.0, %v25_v33  ;;  %vm56_vm9 = vcmp.lt.f32.partialorder %v40_v42, 0.001  ;;  %v22_v48 = vld [vmem:[%s329_s2 + $0x20] sm:$0xff]  ;;  %v88_v51 = vld [vmem:[%s328_s1 + $0x30] sm:$0xff] }
  0x13   :  { %v106_v44 = vmul.f32 %v90_v41, %v74_v40  ;;  %v39_v47 = vand.u32 2147483647, %v23_v43  ;;  %v105_v49 = vmul.f32 %v89_v46, %v73_v45  ;;  %v72_v50 = vsel %vm56_vm9, 0.0, %v24_v38  ;;  %v21_v53 = vld [vmem:[%s329_s2 + $0x18] sm:$0xff]  ;;  %v87_v56 = vld [vmem:[%s328_s1 + $0x28] sm:$0xff]  ;;  %v20_v58 = vld [vmem:[%s329_s2 + $0x10] sm:$0xff] }
  0x14   :  { %118 = vmatpush.xpose.msra.mxu0 %v110_v24  ;;  %v38_v52 = vand.u32 2147483647, %v22_v48  ;;  %v104_v54 = vmul.f32 %v88_v51, %v72_v50  ;;  %v37_v57 = vand.u32 2147483647, %v21_v53  ;;  %v86_v61 = vld [vmem:[%s328_s1 + $0x20] sm:$0xff]  ;;  %v19_v63 = vld [vmem:[%s329_s2 + $0x8] sm:$0xff] }
  0x15   :  { %vm55_vm10 = vcmp.lt.f32.partialorder %v39_v47, 0.001  ;;  %v36_v62 = vand.u32 2147483647, %v20_v58  ;;  %v85_v2 = vld [vmem:[%s328_s1 + $0x18] sm:$0xff]  ;;  %v18_v4 = vld [vmem:[%s329_s2] sm:$0xff] }
  0x16   :  { %v71_v55 = vsel %vm55_vm10, 0.0, %v23_v43  ;;  %vm54_vm11 = vcmp.lt.f32.partialorder %v38_v52, 0.001  ;;  %vm53_vm12 = vcmp.lt.f32.partialorder %v37_v57, 0.001  ;;  %v84_v7 = vld [vmem:[%s328_s1 + $0x10] sm:$0xff] }
  0x17   :  { %v103_v59 = vmul.f32 %v87_v56, %v71_v55  ;;  %v70_v60 = vsel %vm54_vm11, 0.0, %v22_v48  ;;  %v69_v1 = vsel %vm53_vm12, 0.0, %v21_v53  ;;  %vm52_vm13 = vcmp.lt.f32.partialorder %v36_v62, 0.001  ;;  %v83_v11 = vld [vmem:[%s328_s1 + $0x8] sm:$0xff]  ;;  %v82_v14 = vld [vmem:[%s328_s1] sm:$0xff] }
  0x18   :  { %119 = vmatpush.xpose.msra.mxu0 %v109_v29  ;;  %v102_v0 = vmul.f32 %v86_v61, %v70_v60  ;;  %v35_v3 = vand.u32 2147483647, %v19_v63  ;;  %v101_v5 = vmul.f32 %v85_v2, %v69_v1  ;;  %v68_v6 = vsel %vm52_vm13, 0.0, %v20_v58  ;;  %v114_v16 = vld [vmem:[%s327_s0] sm:$0xff]  ;;  %s196_s30 = smov [#allocation2]   ;;  %s159_s8 = sshll.u32 %s331_s4, 4  ;;  %s160_s8 = int_to_ptr.hbm [resolvable:$true] %s159_s8 }
  0x19   :  { %v34_v8 = vand.u32 2147483647, %v18_v4  ;;  %v100_v9 = vmul.f32 %v84_v7, %v68_v6  ;;  %v169_v17 = vld [vmem:[%s330_s3] ss:$0 sm:$0xff]  ;;  %s157_s5 = sshll.u32 %s196_s30, 4  ;;  %s158_s5 = int_to_ptr.vmem [resolvable:$true] %s157_s5 }
  0x1a   :  { %vm51_vm14 = vcmp.lt.f32.partialorder %v35_v3, 0.001 }
  0x1b   :  { %v67_v10 = vsel %vm51_vm14, 0.0, %v19_v63  ;;  %vm50_vm15 = vcmp.lt.f32.partialorder %v34_v8, 0.001 }
  0x1c   :  { %120 = vmatpush.xpose.msra.mxu0 %v108_v34  ;;  %v99_v12 = vmul.f32 %v83_v11, %v67_v10  ;;  %v66_v13 = vsel %vm50_vm15, 0.0, %v18_v4 }
  0x1d   :  { %v98_v15 = vmul.f32 %v82_v14, %v66_v13 }
  0x20   :  { %121 = vmatpush.xpose.msra.mxu0 %v107_v39 }
  0x24   :  { %122 = vmatpush.xpose.msra.mxu0 %v106_v44 }
  0x28   :  { %123 = vmatpush.xpose.msra.mxu0 %v105_v49 }
  0x2c   :  { %124 = vmatpush.xpose.msra.mxu0 %v104_v54 }
  0x30   :  { %125 = vmatpush.xpose.msra.mxu0 %v103_v59 }
  0x34   :  { %126 = vmatpush.xpose.msra.mxu0 %v102_v0 }
  0x38   :  { %127 = vmatpush.xpose.msra.mxu0 %v101_v5 }
  0x3c   :  { %128 = vmatpush.xpose.msra.mxu0 %v100_v9 }
  0x40   :  { %129 = vmatpush.xpose.msra.mxu0 %v99_v12 }
  0x44   :  { %130 = vmatpush.xpose.msra.mxu0 %v98_v15 }
  0x47   :  { %131 = vmatmul.f32.vlgmr.msra.gmra.mxu0 %v114_v16 }
  0xc4   :  { %v132_v18 = vpop.f32.mrf.mxu0 }
  0xc5   :  { %v143_v19 = vadd.f32 %v169_v17, %v132_v18 }
  0xc7   :  { %144 = vst [vmem:[#allocation2] sm:$0xff] %v143_v19 }
  0xc8   :  { %162 = dma.vmem_to_hbm [thread:$0]  %s158_s5, 128, %s160_s8, [#allocation3]  }
  0xc9   :  { %194 = dma.done.wait [#allocation3], 128  }
  0xca   :  { %195 = vsyncadd [#allocation3], 4294967168 }
  0xcb   :  { %167 = vsyncpa [#allocation3], 1 }

</bundles_post_ra>
